<compile_context>
chip_gen: v7x
topology: tpu7x:2x2x1
jax: 0.10.0
libtpu: 0.0.40
codegen_flags: <defaults>
</compile_context>

<pallas_src>
import functools

import jax
import jax.numpy as jnp
from jax.experimental import pallas as pl
from jax.experimental.pallas import tpu as pltpu

_EPS = 1e-5
_ACT_DTYPE = jnp.bfloat16            # storage dtype for intermediate activations


# ------------------------------ kernels ------------------------------------

def _stats_2col(v):
    # (C, TL) f32 -> (C, 2): column 0 = sum over lanes, column 1 = sum of squares.
    return jnp.concatenate([jnp.sum(v, axis=1, keepdims=True),
                            jnp.sum(v * v, axis=1, keepdims=True)], axis=1)


def _make_head_kernel(has_shortcut):
    """init 1x1 conv (+ shortcut 1x1 conv stats only) + partial BN statistics."""
    if has_shortcut:
        def kernel(x_ref, wi_ref, ws_ref, h1_ref, st1_ref, st4_ref):
            xb = x_ref[0].astype(jnp.bfloat16)                        # (Cin, TL)
            h1 = jnp.dot(wi_ref[...], xb, preferred_element_type=jnp.float32)
            h1_ref[0] = h1.astype(h1_ref.dtype)
            st1_ref[0, 0] = _stats_2col(h1)
            # shortcut: stats only, s = Ws @ x is recomputed in the final kernel.
            s = jnp.dot(ws_ref[...], xb, preferred_element_type=jnp.float32)
            st4_ref[0, 0] = _stats_2col(s)
    else:
        def kernel(x_ref, wi_ref, h1_ref, st1_ref):
            xb = x_ref[0].astype(jnp.bfloat16)
            h1 = jnp.dot(wi_ref[...], xb, preferred_element_type=jnp.float32)
            h1_ref[0] = h1.astype(h1_ref.dtype)
            st1_ref[0, 0] = _stats_2col(h1)
    return kernel


def _make_mid_kernel(K, HW, L, folded):
    """Apply BN1+relu, then the K-tap conv over an L tile with halo blocks."""
    pad = K // 2

    def kernel(c_ref, l_ref, r_ref, sc1_ref, sh1_ref, w_ref, h2_ref, st_ref):
        TL = c_ref.shape[-1]
        TLE = TL + 2 * HW
        base = pl.program_id(1) * TL
        # Extended row: [left halo | center tile | right halo], BN1 + relu, then
        # zero columns that fall outside [0, L) (matches PyTorch zero padding of
        # the relu'd conv input).  Mask is computed once (not per tap), in f32.
        ext = jnp.concatenate([l_ref[0], c_ref[0], r_ref[0]],
                              axis=1).astype(jnp.float32)             # (ch, TLE)
        ext = jnp.maximum(ext * sc1_ref[...] + sh1_ref[...], 0.0)
        lane = jax.lax.broadcasted_iota(jnp.int32, (1, TLE), 1)
        gcol = lane + (base - HW)
        ext = jnp.where((gcol >= 0) & (gcol < L), ext, 0.0)

        if folded:
            # Stack the K shifted taps along sublanes -> one deep MXU contraction.
            taps = jnp.concatenate(
                [ext[:, HW + d - pad: HW + d - pad + TL] for d in range(K)],
                axis=0).astype(jnp.bfloat16)                          # (K*ch, TL)
            h2 = jnp.dot(w_ref[...], taps, preferred_element_type=jnp.float32)
        else:
            # Small-channel fallback (ch not a multiple of 8): per-tap matmuls.
            extb = ext.astype(jnp.bfloat16)                           # one cast only
            h2 = None
            for d in range(K):
                tap = extb[:, HW + d - pad: HW + d - pad + TL]
                c = jnp.dot(w_ref[d], tap, preferred_element_type=jnp.float32)
                h2 = c if h2 is None else h2 + c

        h2_ref[0] = h2.astype(h2_ref.dtype)
        st_ref[0, 0] = _stats_2col(h2)
    return kernel


def _tail_kernel(h2_ref, sc2_ref, sh2_ref, wo_ref, st3_ref):
    """Stats-only pass: BN2+relu, out 1x1 conv, emit only (sum, sumsq)."""
    h2 = jnp.maximum(h2_ref[0].astype(jnp.float32) * sc2_ref[...] + sh2_ref[...], 0.0)
    h3 = jnp.dot(wo_ref[...], h2.astype(jnp.bfloat16),
                 preferred_element_type=jnp.float32)
    st3_ref[0, 0] = _stats_2col(h3)


def _make_final_kernel(has_shortcut):
    """Recompute out 1x1 conv, apply BN3 (+BN4 on recomputed shortcut), add, relu."""
    if has_shortcut:
        def kernel(h2_ref, x_ref, sc2_ref, sh2_ref, wo_ref, sc3_ref, sh3_ref,
                   ws_ref, sc4_ref, sh4_ref, o_ref):
            h2 = jnp.maximum(h2_ref[0].astype(jnp.float32) * sc2_ref[...]
                             + sh2_ref[...], 0.0)
            h3 = jnp.dot(wo_ref[...], h2.astype(jnp.bfloat16),
                         preferred_element_type=jnp.float32)
            h = h3 * sc3_ref[...] + sh3_ref[...]
            s = jnp.dot(ws_ref[...], x_ref[0].astype(jnp.bfloat16),
                        preferred_element_type=jnp.float32)
            s = s * sc4_ref[...] + sh4_ref[...]
            o_ref[0] = jnp.maximum(h + s, 0.0).astype(o_ref.dtype)
    else:
        def kernel(h2_ref, x_ref, sc2_ref, sh2_ref, wo_ref, sc3_ref, sh3_ref, o_ref):
            h2 = jnp.maximum(h2_ref[0].astype(jnp.float32) * sc2_ref[...]
                             + sh2_ref[...], 0.0)
            h3 = jnp.dot(wo_ref[...], h2.astype(jnp.bfloat16),
                         preferred_element_type=jnp.float32)
            h = h3 * sc3_ref[...] + sh3_ref[...]
            o_ref[0] = jnp.maximum(h + x_ref[0].astype(jnp.float32),
                                   0.0).astype(o_ref.dtype)
    return kernel


# ------------------------------ wrapper -------------------------------------

def _vmem_budget_bytes():
    """Generation-specific scoped-VMEM budget (half of physical, capped)."""
    try:
        info = pltpu.get_tpu_info()
        cap = int(getattr(info, "vmem_capacity_bytes", 64 * 1024 * 1024))
    except Exception:
        cap = 64 * 1024 * 1024
    return max(16 * 1024 * 1024, min(cap // 2, 96 * 1024 * 1024))


def _pick_tile_l(L, Cin, ch, Cout, K, budget):
    """Largest multiple-of-128 divisor of L whose per-pass working set fits budget."""
    if L % 128 != 0:
        return L
    # rough bytes per lane of tile (double-buffered blocks + in-kernel temporaries)
    head = 2 * (4 * Cin + 2 * ch) + 4 * ch + 4 * Cout
    mid = 2 * (2 * ch + 2 * ch) + (12 + 6 * K) * ch
    final = 2 * (2 * ch + 4 * Cin + 4 * Cout) + 6 * ch + 12 * Cout
    per_lane = max(head, mid, final)
    avail = max(budget // 2, 1)          # leave headroom for weights/compiler scratch
    best, t = 128, 128
    while t <= min(L, 4096):
        if L % t == 0 and t * per_lane <= avail:
            best = t
        t += 128
    return best


def _fold_bn(stats, count, gamma, beta):
    """Reduce packed (N, nLT, C, 2) partials -> per-channel (scale, shift)."""
    tot = jnp.sum(stats, axis=(0, 1))                        # (C, 2) f32
    mean = tot[:, 0] / count
    var = jnp.maximum(tot[:, 1] / count - mean * mean, 0.0)  # biased variance
    scale = gamma * jax.lax.rsqrt(var + _EPS)
    shift = beta - scale * mean
    return scale.reshape(-1, 1), shift.reshape(-1, 1)


@functools.partial(jax.jit, static_argnames=("tile_l",))
def resblock1d_pallas(params, x_ncl, tile_l=None):
    """ResBlock1d forward.  x_ncl: (N, Cin, L) f32 -> (N, Cout, L) f32."""
    N, Cin, L = x_ncl.shape
    wi, _, gi, bti = params["init"]
    wc, _, gc, btc = params["conv"]
    wo, _, go, bto = params["out"]
    has_short = params["short"] is not None
    ch, Cout, K = wi.shape[0], wo.shape[0], wc.shape[2]
    pad = K // 2
    if not has_short:
        assert Cin == Cout, "identity shortcut requires Cin == Cout"

    budget = _vmem_budget_bytes()
    TL = tile_l if tile_l is not None else _pick_tile_l(L, Cin, ch, Cout, K, budget)
    assert L % TL == 0 and (TL % 128 == 0 or TL == L), (L, TL)
    nLT = L // TL
    HW = 128 if L % 128 == 0 else L       # halo block width (lane-aligned)
    assert HW >= pad
    R = TL // HW                          # halo-width blocks per L tile
    nHB = L // HW                         # total halo-width blocks
    count = jnp.float32(N * L)
    folded = (ch % 8 == 0) and (K > 1)    # fold K taps into one MXU contraction

    # Weights in MXU-friendly bf16; conv biases dropped (cancelled by train-mode BN).
    Wi = wi[:, :, 0].astype(jnp.bfloat16)                                # (ch,  Cin)
    Wo = wo[:, :, 0].astype(jnp.bfloat16)                                # (Cout, ch)
    if folded:
        # Wmid[o, d*ch + i] = wc[o, i, d]  -> (ch, K*ch)
        Wmid = jnp.transpose(wc, (2, 1, 0)).reshape(K * ch, ch).T.astype(jnp.bfloat16)
    else:
        Wmid = jnp.transpose(wc, (2, 0, 1)).astype(jnp.bfloat16)         # (K, ch, ch)

    cp = pltpu.CompilerParams(dimension_semantics=("parallel", "parallel"),
                              vmem_limit_bytes=budget)
    grid = (N, nLT)

    def _tile(c):
        return pl.BlockSpec((1, c, TL), lambda n, t: (n, 0, t))

    def _stat_spec(c):
        return pl.BlockSpec((1, 1, c, 2), lambda n, t: (n, t, 0, 0))

    def _const(shape):
        zeros = (0,) * len(shape)
        return pl.BlockSpec(shape, lambda n, t: zeros)

    # ---- pass 1: init 1x1 conv (+ shortcut stats only) + partial BN stats ----
    in_specs = [_tile(Cin), _const(Wi.shape)]
    args = [x_ncl, Wi]
    out_shape = [jax.ShapeDtypeStruct((N, ch, L), _ACT_DTYPE),
                 jax.ShapeDtypeStruct((N, nLT, ch, 2), jnp.float32)]
    out_specs = [_tile(ch), _stat_spec(ch)]
    if has_short:
        ws, _, gs, bts = params["short"]
        Ws = ws[:, :, 0].astype(jnp.bfloat16)                            # (Cout, Cin)
        in_specs.append(_const(Ws.shape))
        args.append(Ws)
        out_shape.append(jax.ShapeDtypeStruct((N, nLT, Cout, 2), jnp.float32))
        out_specs.append(_stat_spec(Cout))

    head_out = pl.pallas_call(
        _make_head_kernel(has_short), grid=grid,
        in_specs=in_specs, out_shape=tuple(out_shape), out_specs=tuple(out_specs),
        compiler_params=cp)(*args)
    if has_short:
        h1_pre, st1, st4 = head_out
    else:
        h1_pre, st1 = head_out
    sc1, sh1 = _fold_bn(st1, count, gi, bti)

    # ---- pass 2: BN1+relu, K-tap conv (L-tiled with halo blocks) + stats ------
    halo_l = pl.BlockSpec((1, ch, HW),
                          lambda n, t: (n, 0, jnp.maximum(t * R - 1, 0)))
    halo_r = pl.BlockSpec((1, ch, HW),
                          lambda n, t: (n, 0, jnp.minimum(t * R + R, nHB - 1)))
    h2_pre, st2 = pl.pallas_call(
        _make_mid_kernel(K, HW, L, folded), grid=grid,
        in_specs=[_tile(ch), halo_l, halo_r,
                  _const((ch, 1)), _const((ch, 1)), _const(Wmid.shape)],
        out_shape=(jax.ShapeDtypeStruct((N, ch, L), _ACT_DTYPE),
                   jax.ShapeDtypeStruct((N, nLT, ch, 2), jnp.float32)),
        out_specs=(_tile(ch), _stat_spec(ch)),
        compiler_params=cp)(h1_pre, h1_pre, h1_pre, sc1, sh1, Wmid)
    sc2, sh2 = _fold_bn(st2, count, gc, btc)

    # ---- pass 3: stats only for BN3 (h3 is recomputed in the final kernel) ----
    st3 = pl.pallas_call(
        _tail_kernel, grid=grid,
        in_specs=[_tile(ch), _const((ch, 1)), _const((ch, 1)), _const(Wo.shape)],
        out_shape=jax.ShapeDtypeStruct((N, nLT, Cout, 2), jnp.float32),
        out_specs=_stat_spec(Cout),
        compiler_params=cp)(h2_pre, sc2, sh2, Wo)
    sc3, sh3 = _fold_bn(st3, count, go, bto)

    # ---- pass 4: recompute out conv, BN3 (+ shortcut), residual add, relu -----
    fin_in = [_tile(ch), _tile(Cin), _const((ch, 1)), _const((ch, 1)),
              _const(Wo.shape), _const((Cout, 1)), _const((Cout, 1))]
    fin_args = [h2_pre, x_ncl, sc2, sh2, Wo, sc3, sh3]
    if has_short:
        sc4, sh4 = _fold_bn(st4, count, gs, bts)
        fin_in += [_const(Ws.shape), _const((Cout, 1)), _const((Cout, 1))]
        fin_args += [Ws, sc4, sh4]

    y = pl.pallas_call(
        _make_final_kernel(has_short), grid=grid,
        in_specs=fin_in,
        out_shape=jax.ShapeDtypeStruct((N, Cout, L), x_ncl.dtype),
        out_specs=_tile(Cout),
        compiler_params=cp)(*fin_args)
    return y


# ------------------------------ parameters ----------------------------------

def _conv_init(key, cout, cin, k):
    # PyTorch-style Conv1d init: U(-1/sqrt(cin*k), 1/sqrt(cin*k)).
    bound = 1.0 / float(cin * k) ** 0.5
    kw, kb = jax.random.split(key)
    w = jax.random.uniform(kw, (cout, cin, k), jnp.float32, -bound, bound)
    b = jax.random.uniform(kb, (cout,), jnp.float32, -bound, bound)
    return w, b


def init_resblock_params(key, in_channels, out_channels, kernel_size,
                         channel_divisor=2):
    assert kernel_size % 2 == 1
    ch = out_channels // channel_divisor
    keys = jax.random.split(key, 4)

    def convnorm(k, cout, cin, ksz):
        kc, kg, kb = jax.random.split(k, 3)
        w, b = _conv_init(kc, cout, cin, ksz)
        # Randomized BN affine params for a stronger numerical test than the
        # PyTorch default (gamma=1, beta=0); forward semantics are identical.
        gamma = jax.random.uniform(kg, (cout,), jnp.float32, 0.5, 1.5)
        beta = jax.random.uniform(kb, (cout,), jnp.float32, -0.3, 0.3)
        return (w, b, gamma, beta)

    return {
        "init": convnorm(keys[0], ch, in_channels, 1),
        "conv": convnorm(keys[1], ch, ch, kernel_size),
        "out": convnorm(keys[2], out_channels, ch, 1),
        "short": (convnorm(keys[3], out_channels, in_channels, 1)
                  if in_channels != out_channels else None),
    }


# ------------------------------ pure-JAX reference --------------------------

def _convnorm_ref(x, w, b, gamma, beta, pad):
    y = jax.lax.conv_general_dilated(
        x, w, window_strides=(1,), padding=[(pad, pad)],
        dimension_numbers=("NCH", "OIH", "NCH"))
    y = y + b[None, :, None]
    mean = jnp.mean(y, axis=(0, 2), keepdims=True)
    var = jnp.mean((y - mean) ** 2, axis=(0, 2), keepdims=True)
    return ((y - mean) * jax.lax.rsqrt(var + _EPS) * gamma[None, :, None]
            + beta[None, :, None])


def resblock1d_ref(params, x):
    wi, bi, gi, bti = params["init"]
    wc, bc, gc, btc = params["conv"]
    wo, bo, go, bto = params["out"]
    h = jax.nn.relu(_convnorm_ref(x, wi, bi, gi, bti, 0))
    h = jax.nn.relu(_convnorm_ref(h, wc, bc, gc, btc, wc.shape[2] // 2))
    h = _convnorm_ref(h, wo, bo, go, bto, 0)
    if params["short"] is not None:
        ws, bs, gs, bts = params["short"]
        s = _convnorm_ref(x, ws, bs, gs, bts, 0)
    else:
        s = x
    return jax.nn.relu(h + s)


if __name__ == "__main__":
    key = jax.random.PRNGKey(0)
    cases = [
        # (N, Cin, Cout, L, K, tile_l)
        (2, 4, 8, 128, 3, None),     # projected shortcut, ch=4 (per-tap path)
        (2, 8, 8, 128, 5, None),     # identity shortcut, ch=4, K=5
        (2, 16, 32, 512, 3, 128),    # projected, ch=16 (folded MXU path), halos across 4 tiles
        (1, 16, 16, 256, 5, 128),    # identity, ch=8 (folded), K=5 halos across 2 tiles
    ]
    for (N, Cin, Cout, L, K, tl) in cases:
        key, kx, kp = jax.random.split(key, 3)
        x = jax.random.normal(kx, (N, Cin, L), jnp.float32)
        params = init_resblock_params(kp, Cin, Cout, K)

        y = jax.block_until_ready(resblock1d_pallas(params, x, tile_l=tl))
        y_ref = resblock1d_ref(params, x)

        assert y.shape == (N, Cout, L), y.shape
        err = float(jnp.max(jnp.abs(y - y_ref)))
        # bf16 MXU operands + bf16 intermediate storage -> ~1e-2-level agreement
        # with the all-f32 reference; structural bugs would be O(1) off.
        assert jnp.allclose(y, y_ref, rtol=1e-1, atol=1.5e-1), err
    print("KERNEL_OK")
</pallas_src>

<mosaic_0001>
module attributes {stable_mosaic.version = 11 : i64} {
  func.func @kernel(%arg0: i32, %arg1: i32, %arg2: memref<1x4x128xbf16, #tpu.memory_space<vmem>>, %arg3: memref<1x4x128xbf16, #tpu.memory_space<vmem>>, %arg4: memref<1x4x128xbf16, #tpu.memory_space<vmem>>, %arg5: memref<4x1xf32, #tpu.memory_space<vmem>>, %arg6: memref<4x1xf32, #tpu.memory_space<vmem>>, %arg7: memref<3x4x4xbf16, #tpu.memory_space<vmem>>, %arg8: memref<1x4x128xbf16, #tpu.memory_space<vmem>>, %arg9: memref<1x1x4x2xf32, #tpu.memory_space<vmem>>) attributes {dimension_semantics = [#tpu.dimension_semantics<parallel>, #tpu.dimension_semantics<parallel>], iteration_bounds = array<i64: 2, 1>, scalar_prefetch = 0 : i64, scratch_operands = 0 : i64, tpu.core_type = #tpu.core_type<tc>, window_params = [{transform_indices = @transform_0, window_bounds = array<i64: 1, 4, 128>}, {transform_indices = @transform_1, window_bounds = array<i64: 1, 4, 128>}, {transform_indices = @transform_2, window_bounds = array<i64: 1, 4, 128>}, {pipeline_mode = #tpu.pipeline_mode<synchronous>, transform_indices = @transform_3, window_bounds = array<i64: 4, 1>}, {pipeline_mode = #tpu.pipeline_mode<synchronous>, transform_indices = @transform_4, window_bounds = array<i64: 4, 1>}, {pipeline_mode = #tpu.pipeline_mode<synchronous>, transform_indices = @transform_5, window_bounds = array<i64: 3, 4, 4>}, {transform_indices = @transform_6, window_bounds = array<i64: 1, 4, 128>}, {transform_indices = @transform_7, window_bounds = array<i64: 1, 1, 4, 2>}]} {
    %c128_i32 = arith.constant 128 : i32
    %0 = arith.muli %arg1, %c128_i32 : i32
    %c0 = arith.constant 0 : index
    %c0_0 = arith.constant 0 : index
    %c0_1 = arith.constant 0 : index
    %1 = vector.load %arg3[%c0, %c0_0, %c0_1] : memref<1x4x128xbf16, #tpu.memory_space<vmem>>, vector<1x4x128xbf16>
    %2 = vector.shape_cast %1 : vector<1x4x128xbf16> to vector<4x128xbf16>
    %c0_2 = arith.constant 0 : index
    %c0_3 = arith.constant 0 : index
    %c0_4 = arith.constant 0 : index
    %3 = vector.load %arg2[%c0_2, %c0_3, %c0_4] : memref<1x4x128xbf16, #tpu.memory_space<vmem>>, vector<1x4x128xbf16>
    %4 = vector.shape_cast %3 : vector<1x4x128xbf16> to vector<4x128xbf16>
    %c0_5 = arith.constant 0 : index
    %c0_6 = arith.constant 0 : index
    %c0_7 = arith.constant 0 : index
    %5 = vector.load %arg4[%c0_5, %c0_6, %c0_7] : memref<1x4x128xbf16, #tpu.memory_space<vmem>>, vector<1x4x128xbf16>
    %6 = vector.shape_cast %5 : vector<1x4x128xbf16> to vector<4x128xbf16>
    %7 = tpu.concatenate %2, %4, %6 in 1 : vector<4x128xbf16>, vector<4x128xbf16>, vector<4x128xbf16> -> vector<4x384xbf16>
    %8 = arith.extf %7 : vector<4x384xbf16> to vector<4x384xf32>
    %c0_8 = arith.constant 0 : index
    %c0_9 = arith.constant 0 : index
    %9 = vector.load %arg5[%c0_8, %c0_9] : memref<4x1xf32, #tpu.memory_space<vmem>>, vector<4x1xf32>
    %10 = vector.broadcast %9 : vector<4x1xf32> to vector<4x384xf32>
    %11 = arith.mulf %8, %10 : vector<4x384xf32>
    %c0_10 = arith.constant 0 : index
    %c0_11 = arith.constant 0 : index
    %12 = vector.load %arg6[%c0_10, %c0_11] : memref<4x1xf32, #tpu.memory_space<vmem>>, vector<4x1xf32>
    %13 = vector.broadcast %12 : vector<4x1xf32> to vector<4x384xf32>
    %14 = arith.addf %11, %13 : vector<4x384xf32>
    %cst = arith.constant 0.000000e+00 : f32
    %15 = vector.broadcast %cst : f32 to vector<4x384xf32>
    %16 = arith.maximumf %14, %15 : vector<4x384xf32>
    %17 = tpu.iota {dimensions = array<i32: 1>} : vector<1x384xi32>
    %c128_i32_12 = arith.constant 128 : i32
    %18 = arith.subi %0, %c128_i32_12 : i32
    %19 = vector.broadcast %18 : i32 to vector<1x384xi32>
    %20 = arith.addi %17, %19 : vector<1x384xi32>
    %c0_i32 = arith.constant 0 : i32
    %21 = vector.broadcast %c0_i32 : i32 to vector<1x384xi32>
    %22 = arith.cmpi sge, %20, %21 : vector<1x384xi32>
    %c128_i32_13 = arith.constant 128 : i32
    %23 = vector.broadcast %c128_i32_13 : i32 to vector<1x384xi32>
    %24 = arith.cmpi slt, %20, %23 : vector<1x384xi32>
    %25 = arith.andi %22, %24 : vector<1x384xi1>
    %cst_14 = arith.constant 0.000000e+00 : f32
    %26 = vector.shape_cast %25 : vector<1x384xi1> to vector<1x384xi1>
    %27 = vector.broadcast %26 : vector<1x384xi1> to vector<4x384xi1>
    %28 = vector.broadcast %cst_14 : f32 to vector<4x384xf32>
    %29 = arith.select %27, %16, %28 : vector<4x384xi1>, vector<4x384xf32>
    %30 = arith.truncf %29 : vector<4x384xf32> to vector<4x384xbf16>
    %31 = vector.extract_strided_slice %30 {offsets = [0, 127], sizes = [4, 128], strides = [1, 1]} : vector<4x384xbf16> to vector<4x128xbf16>
    %c0_15 = arith.constant 0 : index
    %c0_16 = arith.constant 0 : index
    %c0_17 = arith.constant 0 : index
    %32 = vector.load %arg7[%c0_15, %c0_16, %c0_17] : memref<3x4x4xbf16, #tpu.memory_space<vmem>>, vector<1x4x4xbf16>
    %33 = vector.shape_cast %32 : vector<1x4x4xbf16> to vector<4x4xbf16>
    %cst_18 = arith.constant dense<0.000000e+00> : vector<4x128xf32>
    %34 = tpu.matmul %33, %31, %cst_18 {dimension_numbers = #tpu.dot_dimension_numbers<[1], [0], [0], [1], [0, 0, 1, 1], [], []>} : vector<4x4xbf16>, vector<4x128xbf16>, vector<4x128xf32> -> vector<4x128xf32>
    %35 = vector.extract_strided_slice %30 {offsets = [0, 128], sizes = [4, 128], strides = [1, 1]} : vector<4x384xbf16> to vector<4x128xbf16>
    %c1 = arith.constant 1 : index
    %c0_19 = arith.constant 0 : index
    %c0_20 = arith.constant 0 : index
    %36 = vector.load %arg7[%c1, %c0_19, %c0_20] : memref<3x4x4xbf16, #tpu.memory_space<vmem>>, vector<1x4x4xbf16>
    %37 = vector.shape_cast %36 : vector<1x4x4xbf16> to vector<4x4xbf16>
    %cst_21 = arith.constant dense<0.000000e+00> : vector<4x128xf32>
    %38 = tpu.matmul %37, %35, %cst_21 {dimension_numbers = #tpu.dot_dimension_numbers<[1], [0], [0], [1], [0, 0, 1, 1], [], []>} : vector<4x4xbf16>, vector<4x128xbf16>, vector<4x128xf32> -> vector<4x128xf32>
    %39 = arith.addf %34, %38 : vector<4x128xf32>
    %40 = vector.extract_strided_slice %30 {offsets = [0, 129], sizes = [4, 128], strides = [1, 1]} : vector<4x384xbf16> to vector<4x128xbf16>
    %c2 = arith.constant 2 : index
    %c0_22 = arith.constant 0 : index
    %c0_23 = arith.constant 0 : index
    %41 = vector.load %arg7[%c2, %c0_22, %c0_23] : memref<3x4x4xbf16, #tpu.memory_space<vmem>>, vector<1x4x4xbf16>
    %42 = vector.shape_cast %41 : vector<1x4x4xbf16> to vector<4x4xbf16>
    %cst_24 = arith.constant dense<0.000000e+00> : vector<4x128xf32>
    %43 = tpu.matmul %42, %40, %cst_24 {dimension_numbers = #tpu.dot_dimension_numbers<[1], [0], [0], [1], [0, 0, 1, 1], [], []>} : vector<4x4xbf16>, vector<4x128xbf16>, vector<4x128xf32> -> vector<4x128xf32>
    %44 = arith.addf %39, %43 : vector<4x128xf32>
    %45 = arith.truncf %44 : vector<4x128xf32> to vector<4x128xbf16>
    %c0_25 = arith.constant 0 : index
    %c0_26 = arith.constant 0 : index
    %c0_27 = arith.constant 0 : index
    %46 = vector.load %arg8[%c0_25, %c0_26, %c0_27] : memref<1x4x128xbf16, #tpu.memory_space<vmem>>, vector<1x4x128xbf16>
    %47 = vector.shape_cast %46 : vector<1x4x128xbf16> to vector<4x128xbf16>
    %48 = vector.shape_cast %45 : vector<4x128xbf16> to vector<1x4x128xbf16>
    tpu.vector_store %arg8[%c0_25, %c0_26, %c0_27], %48 {strides = array<i32>} : memref<1x4x128xbf16, #tpu.memory_space<vmem>>, vector<1x4x128xbf16>,
    %cst_28 = arith.constant dense<0.000000e+00> : vector<4xf32>
    %49 = vector.multi_reduction <add>, %44, %cst_28 [1] : vector<4x128xf32> to vector<4xf32>
    %50 = vector.shape_cast %49 : vector<4xf32> to vector<4x1xf32>
    %51 = arith.mulf %44, %44 : vector<4x128xf32>
    %cst_29 = arith.constant dense<0.000000e+00> : vector<4xf32>
    %52 = vector.multi_reduction <add>, %51, %cst_29 [1] : vector<4x128xf32> to vector<4xf32>
    %53 = vector.shape_cast %52 : vector<4xf32> to vector<4x1xf32>
    %54 = tpu.concatenate %50, %53 in 1 : vector<4x1xf32>, vector<4x1xf32> -> vector<4x2xf32>
    %c0_30 = arith.constant 0 : index
    %c0_31 = arith.constant 0 : index
    %c0_32 = arith.constant 0 : index
    %c0_33 = arith.constant 0 : index
    %55 = vector.load %arg9[%c0_30, %c0_31, %c0_32, %c0_33] : memref<1x1x4x2xf32, #tpu.memory_space<vmem>>, vector<1x1x4x2xf32>
    %56 = vector.shape_cast %55 : vector<1x1x4x2xf32> to vector<4x2xf32>
    %57 = vector.shape_cast %54 : vector<4x2xf32> to vector<1x1x4x2xf32>
    tpu.vector_store %arg9[%c0_30, %c0_31, %c0_32, %c0_33], %57 {strides = array<i32>} : memref<1x1x4x2xf32, #tpu.memory_space<vmem>>, vector<1x1x4x2xf32>,
    return
  }
  func.func @transform_0(%arg0: i32, %arg1: i32) -> (i32, i32, i32) {
    %c0_i32 = arith.constant 0 : i32
    %c0_i32_0 = arith.constant 0 : i32
    return %arg0, %c0_i32, %arg1 : i32, i32, i32
  }
  func.func @transform_1(%arg0: i32, %arg1: i32) -> (i32, i32, i32) {
    %c1_i32 = arith.constant 1 : i32
    %0 = arith.muli %arg1, %c1_i32 : i32
    %c1_i32_0 = arith.constant 1 : i32
    %1 = arith.subi %0, %c1_i32_0 : i32
    %c0_i32 = arith.constant 0 : i32
    %2 = arith.maxsi %1, %c0_i32 : i32
    %c0_i32_1 = arith.constant 0 : i32
    %c0_i32_2 = arith.constant 0 : i32
    return %arg0, %c0_i32_1, %2 : i32, i32, i32
  }
  func.func @transform_2(%arg0: i32, %arg1: i32) -> (i32, i32, i32) {
    %c1_i32 = arith.constant 1 : i32
    %0 = arith.muli %arg1, %c1_i32 : i32
    %c1_i32_0 = arith.constant 1 : i32
    %1 = arith.addi %0, %c1_i32_0 : i32
    %c0_i32 = arith.constant 0 : i32
    %2 = arith.minsi %1, %c0_i32 : i32
    %c0_i32_1 = arith.constant 0 : i32
    %c0_i32_2 = arith.constant 0 : i32
    return %arg0, %c0_i32_1, %2 : i32, i32, i32
  }
  func.func @transform_3(%arg0: i32, %arg1: i32) -> (i32, i32) {
    %c0_i32 = arith.constant 0 : i32
    %c0_i32_0 = arith.constant 0 : i32
    %c0_i32_1 = arith.constant 0 : i32
    return %c0_i32, %c0_i32_0 : i32, i32
  }
  func.func @transform_4(%arg0: i32, %arg1: i32) -> (i32, i32) {
    %c0_i32 = arith.constant 0 : i32
    %c0_i32_0 = arith.constant 0 : i32
    %c0_i32_1 = arith.constant 0 : i32
    return %c0_i32, %c0_i32_0 : i32, i32
  }
  func.func @transform_5(%arg0: i32, %arg1: i32) -> (i32, i32, i32) {
    %c0_i32 = arith.constant 0 : i32
    %c0_i32_0 = arith.constant 0 : i32
    %c0_i32_1 = arith.constant 0 : i32
    %c0_i32_2 = arith.constant 0 : i32
    return %c0_i32, %c0_i32_0, %c0_i32_1 : i32, i32, i32
  }
  func.func @transform_6(%arg0: i32, %arg1: i32) -> (i32, i32, i32) {
    %c0_i32 = arith.constant 0 : i32
    %c0_i32_0 = arith.constant 0 : i32
    return %arg0, %c0_i32, %arg1 : i32, i32, i32
  }
  func.func @transform_7(%arg0: i32, %arg1: i32) -> (i32, i32, i32, i32) {
    %c0_i32 = arith.constant 0 : i32
    %c0_i32_0 = arith.constant 0 : i32
    %c0_i32_1 = arith.constant 0 : i32
    return %arg0, %arg1, %c0_i32, %c0_i32_0 : i32, i32, i32, i32
  }
}

module attributes {stable_mosaic.version = 11 : i64} {
  func.func @kernel(%arg0: i32, %arg1: i32, %arg2: memref<1x4x128xf32, #tpu.memory_space<vmem>>, %arg3: memref<4x4xbf16, #tpu.memory_space<vmem>>, %arg4: memref<8x4xbf16, #tpu.memory_space<vmem>>, %arg5: memref<1x4x128xbf16, #tpu.memory_space<vmem>>, %arg6: memref<1x1x4x2xf32, #tpu.memory_space<vmem>>, %arg7: memref<1x1x8x2xf32, #tpu.memory_space<vmem>>) attributes {dimension_semantics = [#tpu.dimension_semantics<parallel>, #tpu.dimension_semantics<parallel>], iteration_bounds = array<i64: 2, 1>, scalar_prefetch = 0 : i64, scratch_operands = 0 : i64, tpu.core_type = #tpu.core_type<tc>, window_params = [{transform_indices = @transform_0, window_bounds = array<i64: 1, 4, 128>}, {pipeline_mode = #tpu.pipeline_mode<synchronous>, transform_indices = @transform_1, window_bounds = array<i64: 4, 4>}, {pipeline_mode = #tpu.pipeline_mode<synchronous>, transform_indices = @transform_2, window_bounds = array<i64: 8, 4>}, {transform_indices = @transform_3, window_bounds = array<i64: 1, 4, 128>}, {transform_indices = @transform_4, window_bounds = array<i64: 1, 1, 4, 2>}, {transform_indices = @transform_5, window_bounds = array<i64: 1, 1, 8, 2>}]} {
    %c0 = arith.constant 0 : index
    %c0_0 = arith.constant 0 : index
    %c0_1 = arith.constant 0 : index
    %0 = vector.load %arg2[%c0, %c0_0, %c0_1] : memref<1x4x128xf32, #tpu.memory_space<vmem>>, vector<1x4x128xf32>
    %1 = vector.shape_cast %0 : vector<1x4x128xf32> to vector<4x128xf32>
    %2 = arith.truncf %1 : vector<4x128xf32> to vector<4x128xbf16>
    %c0_2 = arith.constant 0 : index
    %c0_3 = arith.constant 0 : index
    %3 = vector.load %arg3[%c0_2, %c0_3] : memref<4x4xbf16, #tpu.memory_space<vmem>>, vector<4x4xbf16>
    %cst = arith.constant dense<0.000000e+00> : vector<4x128xf32>
    %4 = tpu.matmul %3, %2, %cst {dimension_numbers = #tpu.dot_dimension_numbers<[1], [0], [0], [1], [0, 0, 1, 1], [], []>} : vector<4x4xbf16>, vector<4x128xbf16>, vector<4x128xf32> -> vector<4x128xf32>
    %5 = arith.truncf %4 : vector<4x128xf32> to vector<4x128xbf16>
    %c0_4 = arith.constant 0 : index
    %c0_5 = arith.constant 0 : index
    %c0_6 = arith.constant 0 : index
    %6 = vector.load %arg5[%c0_4, %c0_5, %c0_6] : memref<1x4x128xbf16, #tpu.memory_space<vmem>>, vector<1x4x128xbf16>
    %7 = vector.shape_cast %6 : vector<1x4x128xbf16> to vector<4x128xbf16>
    %8 = vector.shape_cast %5 : vector<4x128xbf16> to vector<1x4x128xbf16>
    tpu.vector_store %arg5[%c0_4, %c0_5, %c0_6], %8 {strides = array<i32>} : memref<1x4x128xbf16, #tpu.memory_space<vmem>>, vector<1x4x128xbf16>,
    %cst_7 = arith.constant dense<0.000000e+00> : vector<4xf32>
    %9 = vector.multi_reduction <add>, %4, %cst_7 [1] : vector<4x128xf32> to vector<4xf32>
    %10 = vector.shape_cast %9 : vector<4xf32> to vector<4x1xf32>
    %11 = arith.mulf %4, %4 : vector<4x128xf32>
    %cst_8 = arith.constant dense<0.000000e+00> : vector<4xf32>
    %12 = vector.multi_reduction <add>, %11, %cst_8 [1] : vector<4x128xf32> to vector<4xf32>
    %13 = vector.shape_cast %12 : vector<4xf32> to vector<4x1xf32>
    %14 = tpu.concatenate %10, %13 in 1 : vector<4x1xf32>, vector<4x1xf32> -> vector<4x2xf32>
    %c0_9 = arith.constant 0 : index
    %c0_10 = arith.constant 0 : index
    %c0_11 = arith.constant 0 : index
    %c0_12 = arith.constant 0 : index
    %15 = vector.load %arg6[%c0_9, %c0_10, %c0_11, %c0_12] : memref<1x1x4x2xf32, #tpu.memory_space<vmem>>, vector<1x1x4x2xf32>
    %16 = vector.shape_cast %15 : vector<1x1x4x2xf32> to vector<4x2xf32>
    %17 = vector.shape_cast %14 : vector<4x2xf32> to vector<1x1x4x2xf32>
    tpu.vector_store %arg6[%c0_9, %c0_10, %c0_11, %c0_12], %17 {strides = array<i32>} : memref<1x1x4x2xf32, #tpu.memory_space<vmem>>, vector<1x1x4x2xf32>,
    %c0_13 = arith.constant 0 : index
    %c0_14 = arith.constant 0 : index
    %18 = vector.load %arg4[%c0_13, %c0_14] : memref<8x4xbf16, #tpu.memory_space<vmem>>, vector<8x4xbf16>
    %cst_15 = arith.constant dense<0.000000e+00> : vector<8x128xf32>
    %19 = tpu.matmul %18, %2, %cst_15 {dimension_numbers = #tpu.dot_dimension_numbers<[1], [0], [0], [1], [0, 0, 1, 1], [], []>} : vector<8x4xbf16>, vector<4x128xbf16>, vector<8x128xf32> -> vector<8x128xf32>
    %cst_16 = arith.constant dense<0.000000e+00> : vector<8xf32>
    %20 = vector.multi_reduction <add>, %19, %cst_16 [1] : vector<8x128xf32> to vector<8xf32>
    %21 = vector.shape_cast %20 : vector<8xf32> to vector<8x1xf32>
    %22 = arith.mulf %19, %19 : vector<8x128xf32>
    %cst_17 = arith.constant dense<0.000000e+00> : vector<8xf32>
    %23 = vector.multi_reduction <add>, %22, %cst_17 [1] : vector<8x128xf32> to vector<8xf32>
    %24 = vector.shape_cast %23 : vector<8xf32> to vector<8x1xf32>
    %25 = tpu.concatenate %21, %24 in 1 : vector<8x1xf32>, vector<8x1xf32> -> vector<8x2xf32>
    %c0_18 = arith.constant 0 : index
    %c0_19 = arith.constant 0 : index
    %c0_20 = arith.constant 0 : index
    %c0_21 = arith.constant 0 : index
    %26 = vector.load %arg7[%c0_18, %c0_19, %c0_20, %c0_21] : memref<1x1x8x2xf32, #tpu.memory_space<vmem>>, vector<1x1x8x2xf32>
    %27 = vector.shape_cast %26 : vector<1x1x8x2xf32> to vector<8x2xf32>
    %28 = vector.shape_cast %25 : vector<8x2xf32> to vector<1x1x8x2xf32>
    tpu.vector_store %arg7[%c0_18, %c0_19, %c0_20, %c0_21], %28 {strides = array<i32>} : memref<1x1x8x2xf32, #tpu.memory_space<vmem>>, vector<1x1x8x2xf32>,
    return
  }
  func.func @transform_0(%arg0: i32, %arg1: i32) -> (i32, i32, i32) {
    %c0_i32 = arith.constant 0 : i32
    %c0_i32_0 = arith.constant 0 : i32
    return %arg0, %c0_i32, %arg1 : i32, i32, i32
  }
  func.func @transform_1(%arg0: i32, %arg1: i32) -> (i32, i32) {
    %c0_i32 = arith.constant 0 : i32
    %c0_i32_0 = arith.constant 0 : i32
    %c0_i32_1 = arith.constant 0 : i32
    return %c0_i32, %c0_i32_0 : i32, i32
  }
  func.func @transform_2(%arg0: i32, %arg1: i32) -> (i32, i32) {
    %c0_i32 = arith.constant 0 : i32
    %c0_i32_0 = arith.constant 0 : i32
    %c0_i32_1 = arith.constant 0 : i32
    return %c0_i32, %c0_i32_0 : i32, i32
  }
  func.func @transform_3(%arg0: i32, %arg1: i32) -> (i32, i32, i32) {
    %c0_i32 = arith.constant 0 : i32
    %c0_i32_0 = arith.constant 0 : i32
    return %arg0, %c0_i32, %arg1 : i32, i32, i32
  }
  func.func @transform_4(%arg0: i32, %arg1: i32) -> (i32, i32, i32, i32) {
    %c0_i32 = arith.constant 0 : i32
    %c0_i32_0 = arith.constant 0 : i32
    %c0_i32_1 = arith.constant 0 : i32
    return %arg0, %arg1, %c0_i32, %c0_i32_0 : i32, i32, i32, i32
  }
  func.func @transform_5(%arg0: i32, %arg1: i32) -> (i32, i32, i32, i32) {
    %c0_i32 = arith.constant 0 : i32
    %c0_i32_0 = arith.constant 0 : i32
    %c0_i32_1 = arith.constant 0 : i32
    return %arg0, %arg1, %c0_i32, %c0_i32_0 : i32, i32, i32, i32
  }
}

module attributes {stable_mosaic.version = 11 : i64} {
  func.func @kernel(%arg0: i32, %arg1: i32, %arg2: memref<1x4x128xbf16, #tpu.memory_space<vmem>>, %arg3: memref<1x4x128xf32, #tpu.memory_space<vmem>>, %arg4: memref<4x1xf32, #tpu.memory_space<vmem>>, %arg5: memref<4x1xf32, #tpu.memory_space<vmem>>, %arg6: memref<8x4xbf16, #tpu.memory_space<vmem>>, %arg7: memref<8x1xf32, #tpu.memory_space<vmem>>, %arg8: memref<8x1xf32, #tpu.memory_space<vmem>>, %arg9: memref<8x4xbf16, #tpu.memory_space<vmem>>, %arg10: memref<8x1xf32, #tpu.memory_space<vmem>>, %arg11: memref<8x1xf32, #tpu.memory_space<vmem>>, %arg12: memref<1x8x128xf32, #tpu.memory_space<vmem>>) attributes {dimension_semantics = [#tpu.dimension_semantics<parallel>, #tpu.dimension_semantics<parallel>], iteration_bounds = array<i64: 2, 1>, scalar_prefetch = 0 : i64, scratch_operands = 0 : i64, tpu.core_type = #tpu.core_type<tc>, window_params = [{transform_indices = @transform_0, window_bounds = array<i64: 1, 4, 128>}, {transform_indices = @transform_1, window_bounds = array<i64: 1, 4, 128>}, {pipeline_mode = #tpu.pipeline_mode<synchronous>, transform_indices = @transform_2, window_bounds = array<i64: 4, 1>}, {pipeline_mode = #tpu.pipeline_mode<synchronous>, transform_indices = @transform_3, window_bounds = array<i64: 4, 1>}, {pipeline_mode = #tpu.pipeline_mode<synchronous>, transform_indices = @transform_4, window_bounds = array<i64: 8, 4>}, {pipeline_mode = #tpu.pipeline_mode<synchronous>, transform_indices = @transform_5, window_bounds = array<i64: 8, 1>}, {pipeline_mode = #tpu.pipeline_mode<synchronous>, transform_indices = @transform_6, window_bounds = array<i64: 8, 1>}, {pipeline_mode = #tpu.pipeline_mode<synchronous>, transform_indices = @transform_7, window_bounds = array<i64: 8, 4>}, {pipeline_mode = #tpu.pipeline_mode<synchronous>, transform_indices = @transform_8, window_bounds = array<i64: 8, 1>}, {pipeline_mode = #tpu.pipeline_mode<synchronous>, transform_indices = @transform_9, window_bounds = array<i64: 8, 1>}, {transform_indices = @transform_10, window_bounds = array<i64: 1, 8, 128>}]} {
    %c0 = arith.constant 0 : index
    %c0_0 = arith.constant 0 : index
    %c0_1 = arith.constant 0 : index
    %0 = vector.load %arg2[%c0, %c0_0, %c0_1] : memref<1x4x128xbf16, #tpu.memory_space<vmem>>, vector<1x4x128xbf16>
    %1 = vector.shape_cast %0 : vector<1x4x128xbf16> to vector<4x128xbf16>
    %2 = arith.extf %1 : vector<4x128xbf16> to vector<4x128xf32>
    %c0_2 = arith.constant 0 : index
    %c0_3 = arith.constant 0 : index
    %3 = vector.load %arg4[%c0_2, %c0_3] : memref<4x1xf32, #tpu.memory_space<vmem>>, vector<4x1xf32>
    %4 = vector.broadcast %3 : vector<4x1xf32> to vector<4x128xf32>
    %5 = arith.mulf %2, %4 : vector<4x128xf32>
    %c0_4 = arith.constant 0 : index
    %c0_5 = arith.constant 0 : index
    %6 = vector.load %arg5[%c0_4, %c0_5] : memref<4x1xf32, #tpu.memory_space<vmem>>, vector<4x1xf32>
    %7 = vector.broadcast %6 : vector<4x1xf32> to vector<4x128xf32>
    %8 = arith.addf %5, %7 : vector<4x128xf32>
    %cst = arith.constant 0.000000e+00 : f32
    %9 = vector.broadcast %cst : f32 to vector<4x128xf32>
    %10 = arith.maximumf %8, %9 : vector<4x128xf32>
    %c0_6 = arith.constant 0 : index
    %c0_7 = arith.constant 0 : index
    %11 = vector.load %arg6[%c0_6, %c0_7] : memref<8x4xbf16, #tpu.memory_space<vmem>>, vector<8x4xbf16>
    %12 = arith.truncf %10 : vector<4x128xf32> to vector<4x128xbf16>
    %cst_8 = arith.constant dense<0.000000e+00> : vector<8x128xf32>
    %13 = tpu.matmul %11, %12, %cst_8 {dimension_numbers = #tpu.dot_dimension_numbers<[1], [0], [0], [1], [0, 0, 1, 1], [], []>} : vector<8x4xbf16>, vector<4x128xbf16>, vector<8x128xf32> -> vector<8x128xf32>
    %c0_9 = arith.constant 0 : index
    %c0_10 = arith.constant 0 : index
    %14 = vector.load %arg7[%c0_9, %c0_10] : memref<8x1xf32, #tpu.memory_space<vmem>>, vector<8x1xf32>
    %15 = vector.broadcast %14 : vector<8x1xf32> to vector<8x128xf32>
    %16 = arith.mulf %13, %15 : vector<8x128xf32>
    %c0_11 = arith.constant 0 : index
    %c0_12 = arith.constant 0 : index
    %17 = vector.load %arg8[%c0_11, %c0_12] : memref<8x1xf32, #tpu.memory_space<vmem>>, vector<8x1xf32>
    %18 = vector.broadcast %17 : vector<8x1xf32> to vector<8x128xf32>
    %19 = arith.addf %16, %18 : vector<8x128xf32>
    %c0_13 = arith.constant 0 : index
    %c0_14 = arith.constant 0 : index
    %20 = vector.load %arg9[%c0_13, %c0_14] : memref<8x4xbf16, #tpu.memory_space<vmem>>, vector<8x4xbf16>
    %c0_15 = arith.constant 0 : index
    %c0_16 = arith.constant 0 : index
    %c0_17 = arith.constant 0 : index
    %21 = vector.load %arg3[%c0_15, %c0_16, %c0_17] : memref<1x4x128xf32, #tpu.memory_space<vmem>>, vector<1x4x128xf32>
    %22 = vector.shape_cast %21 : vector<1x4x128xf32> to vector<4x128xf32>
    %23 = arith.truncf %22 : vector<4x128xf32> to vector<4x128xbf16>
    %cst_18 = arith.constant dense<0.000000e+00> : vector<8x128xf32>
    %24 = tpu.matmul %20, %23, %cst_18 {dimension_numbers = #tpu.dot_dimension_numbers<[1], [0], [0], [1], [0, 0, 1, 1], [], []>} : vector<8x4xbf16>, vector<4x128xbf16>, vector<8x128xf32> -> vector<8x128xf32>
    %c0_19 = arith.constant 0 : index
    %c0_20 = arith.constant 0 : index
    %25 = vector.load %arg10[%c0_19, %c0_20] : memref<8x1xf32, #tpu.memory_space<vmem>>, vector<8x1xf32>
    %26 = vector.broadcast %25 : vector<8x1xf32> to vector<8x128xf32>
    %27 = arith.mulf %24, %26 : vector<8x128xf32>
    %c0_21 = arith.constant 0 : index
    %c0_22 = arith.constant 0 : index
    %28 = vector.load %arg11[%c0_21, %c0_22] : memref<8x1xf32, #tpu.memory_space<vmem>>, vector<8x1xf32>
    %29 = vector.broadcast %28 : vector<8x1xf32> to vector<8x128xf32>
    %30 = arith.addf %27, %29 : vector<8x128xf32>
    %31 = arith.addf %19, %30 : vector<8x128xf32>
    %cst_23 = arith.constant 0.000000e+00 : f32
    %32 = vector.broadcast %cst_23 : f32 to vector<8x128xf32>
    %33 = arith.maximumf %31, %32 : vector<8x128xf32>
    %c0_24 = arith.constant 0 : index
    %c0_25 = arith.constant 0 : index
    %c0_26 = arith.constant 0 : index
    %34 = vector.load %arg12[%c0_24, %c0_25, %c0_26] : memref<1x8x128xf32, #tpu.memory_space<vmem>>, vector<1x8x128xf32>
    %35 = vector.shape_cast %34 : vector<1x8x128xf32> to vector<8x128xf32>
    %36 = vector.shape_cast %33 : vector<8x128xf32> to vector<1x8x128xf32>
    tpu.vector_store %arg12[%c0_24, %c0_25, %c0_26], %36 {strides = array<i32>} : memref<1x8x128xf32, #tpu.memory_space<vmem>>, vector<1x8x128xf32>,
    return
  }
  func.func @transform_0(%arg0: i32, %arg1: i32) -> (i32, i32, i32) {
    %c0_i32 = arith.constant 0 : i32
    %c0_i32_0 = arith.constant 0 : i32
    return %arg0, %c0_i32, %arg1 : i32, i32, i32
  }
  func.func @transform_1(%arg0: i32, %arg1: i32) -> (i32, i32, i32) {
    %c0_i32 = arith.constant 0 : i32
    %c0_i32_0 = arith.constant 0 : i32
    return %arg0, %c0_i32, %arg1 : i32, i32, i32
  }
  func.func @transform_2(%arg0: i32, %arg1: i32) -> (i32, i32) {
    %c0_i32 = arith.constant 0 : i32
    %c0_i32_0 = arith.constant 0 : i32
    %c0_i32_1 = arith.constant 0 : i32
    return %c0_i32, %c0_i32_0 : i32, i32
  }
  func.func @transform_3(%arg0: i32, %arg1: i32) -> (i32, i32) {
    %c0_i32 = arith.constant 0 : i32
    %c0_i32_0 = arith.constant 0 : i32
    %c0_i32_1 = arith.constant 0 : i32
    return %c0_i32, %c0_i32_0 : i32, i32
  }
  func.func @transform_4(%arg0: i32, %arg1: i32) -> (i32, i32) {
    %c0_i32 = arith.constant 0 : i32
    %c0_i32_0 = arith.constant 0 : i32
    %c0_i32_1 = arith.constant 0 : i32
    return %c0_i32, %c0_i32_0 : i32, i32
  }
  func.func @transform_5(%arg0: i32, %arg1: i32) -> (i32, i32) {
    %c0_i32 = arith.constant 0 : i32
    %c0_i32_0 = arith.constant 0 : i32
    %c0_i32_1 = arith.constant 0 : i32
    return %c0_i32, %c0_i32_0 : i32, i32
  }
  func.func @transform_6(%arg0: i32, %arg1: i32) -> (i32, i32) {
    %c0_i32 = arith.constant 0 : i32
    %c0_i32_0 = arith.constant 0 : i32
    %c0_i32_1 = arith.constant 0 : i32
    return %c0_i32, %c0_i32_0 : i32, i32
  }
  func.func @transform_7(%arg0: i32, %arg1: i32) -> (i32, i32) {
    %c0_i32 = arith.constant 0 : i32
    %c0_i32_0 = arith.constant 0 : i32
    %c0_i32_1 = arith.constant 0 : i32
    return %c0_i32, %c0_i32_0 : i32, i32
  }
  func.func @transform_8(%arg0: i32, %arg1: i32) -> (i32, i32) {
    %c0_i32 = arith.constant 0 : i32
    %c0_i32_0 = arith.constant 0 : i32
    %c0_i32_1 = arith.constant 0 : i32
    return %c0_i32, %c0_i32_0 : i32, i32
  }
  func.func @transform_9(%arg0: i32, %arg1: i32) -> (i32, i32) {
    %c0_i32 = arith.constant 0 : i32
    %c0_i32_0 = arith.constant 0 : i32
    %c0_i32_1 = arith.constant 0 : i32
    return %c0_i32, %c0_i32_0 : i32, i32
  }
  func.func @transform_10(%arg0: i32, %arg1: i32) -> (i32, i32, i32) {
    %c0_i32 = arith.constant 0 : i32
    %c0_i32_0 = arith.constant 0 : i32
    return %arg0, %c0_i32, %arg1 : i32, i32, i32
  }
}

module attributes {stable_mosaic.version = 11 : i64} {
  func.func @_tail_kernel(%arg0: i32, %arg1: i32, %arg2: memref<1x4x128xbf16, #tpu.memory_space<vmem>>, %arg3: memref<4x1xf32, #tpu.memory_space<vmem>>, %arg4: memref<4x1xf32, #tpu.memory_space<vmem>>, %arg5: memref<8x4xbf16, #tpu.memory_space<vmem>>, %arg6: memref<1x1x8x2xf32, #tpu.memory_space<vmem>>) attributes {dimension_semantics = [#tpu.dimension_semantics<parallel>, #tpu.dimension_semantics<parallel>], iteration_bounds = array<i64: 2, 1>, scalar_prefetch = 0 : i64, scratch_operands = 0 : i64, tpu.core_type = #tpu.core_type<tc>, window_params = [{transform_indices = @transform_0, window_bounds = array<i64: 1, 4, 128>}, {pipeline_mode = #tpu.pipeline_mode<synchronous>, transform_indices = @transform_1, window_bounds = array<i64: 4, 1>}, {pipeline_mode = #tpu.pipeline_mode<synchronous>, transform_indices = @transform_2, window_bounds = array<i64: 4, 1>}, {pipeline_mode = #tpu.pipeline_mode<synchronous>, transform_indices = @transform_3, window_bounds = array<i64: 8, 4>}, {transform_indices = @transform_4, window_bounds = array<i64: 1, 1, 8, 2>}]} {
    %c0 = arith.constant 0 : index
    %c0_0 = arith.constant 0 : index
    %c0_1 = arith.constant 0 : index
    %0 = vector.load %arg2[%c0, %c0_0, %c0_1] : memref<1x4x128xbf16, #tpu.memory_space<vmem>>, vector<1x4x128xbf16>
    %1 = vector.shape_cast %0 : vector<1x4x128xbf16> to vector<4x128xbf16>
    %2 = arith.extf %1 : vector<4x128xbf16> to vector<4x128xf32>
    %c0_2 = arith.constant 0 : index
    %c0_3 = arith.constant 0 : index
    %3 = vector.load %arg3[%c0_2, %c0_3] : memref<4x1xf32, #tpu.memory_space<vmem>>, vector<4x1xf32>
    %4 = vector.broadcast %3 : vector<4x1xf32> to vector<4x128xf32>
    %5 = arith.mulf %2, %4 : vector<4x128xf32>
    %c0_4 = arith.constant 0 : index
    %c0_5 = arith.constant 0 : index
    %6 = vector.load %arg4[%c0_4, %c0_5] : memref<4x1xf32, #tpu.memory_space<vmem>>, vector<4x1xf32>
    %7 = vector.broadcast %6 : vector<4x1xf32> to vector<4x128xf32>
    %8 = arith.addf %5, %7 : vector<4x128xf32>
    %cst = arith.constant 0.000000e+00 : f32
    %9 = vector.broadcast %cst : f32 to vector<4x128xf32>
    %10 = arith.maximumf %8, %9 : vector<4x128xf32>
    %c0_6 = arith.constant 0 : index
    %c0_7 = arith.constant 0 : index
    %11 = vector.load %arg5[%c0_6, %c0_7] : memref<8x4xbf16, #tpu.memory_space<vmem>>, vector<8x4xbf16>
    %12 = arith.truncf %10 : vector<4x128xf32> to vector<4x128xbf16>
    %cst_8 = arith.constant dense<0.000000e+00> : vector<8x128xf32>
    %13 = tpu.matmul %11, %12, %cst_8 {dimension_numbers = #tpu.dot_dimension_numbers<[1], [0], [0], [1], [0, 0, 1, 1], [], []>} : vector<8x4xbf16>, vector<4x128xbf16>, vector<8x128xf32> -> vector<8x128xf32>
    %cst_9 = arith.constant dense<0.000000e+00> : vector<8xf32>
    %14 = vector.multi_reduction <add>, %13, %cst_9 [1] : vector<8x128xf32> to vector<8xf32>
    %15 = vector.shape_cast %14 : vector<8xf32> to vector<8x1xf32>
    %16 = arith.mulf %13, %13 : vector<8x128xf32>
    %cst_10 = arith.constant dense<0.000000e+00> : vector<8xf32>
    %17 = vector.multi_reduction <add>, %16, %cst_10 [1] : vector<8x128xf32> to vector<8xf32>
    %18 = vector.shape_cast %17 : vector<8xf32> to vector<8x1xf32>
    %19 = tpu.concatenate %15, %18 in 1 : vector<8x1xf32>, vector<8x1xf32> -> vector<8x2xf32>
    %c0_11 = arith.constant 0 : index
    %c0_12 = arith.constant 0 : index
    %c0_13 = arith.constant 0 : index
    %c0_14 = arith.constant 0 : index
    %20 = vector.load %arg6[%c0_11, %c0_12, %c0_13, %c0_14] : memref<1x1x8x2xf32, #tpu.memory_space<vmem>>, vector<1x1x8x2xf32>
    %21 = vector.shape_cast %20 : vector<1x1x8x2xf32> to vector<8x2xf32>
    %22 = vector.shape_cast %19 : vector<8x2xf32> to vector<1x1x8x2xf32>
    tpu.vector_store %arg6[%c0_11, %c0_12, %c0_13, %c0_14], %22 {strides = array<i32>} : memref<1x1x8x2xf32, #tpu.memory_space<vmem>>, vector<1x1x8x2xf32>,
    return
  }
  func.func @transform_0(%arg0: i32, %arg1: i32) -> (i32, i32, i32) {
    %c0_i32 = arith.constant 0 : i32
    %c0_i32_0 = arith.constant 0 : i32
    return %arg0, %c0_i32, %arg1 : i32, i32, i32
  }
  func.func @transform_1(%arg0: i32, %arg1: i32) -> (i32, i32) {
    %c0_i32 = arith.constant 0 : i32
    %c0_i32_0 = arith.constant 0 : i32
    %c0_i32_1 = arith.constant 0 : i32
    return %c0_i32, %c0_i32_0 : i32, i32
  }
  func.func @transform_2(%arg0: i32, %arg1: i32) -> (i32, i32) {
    %c0_i32 = arith.constant 0 : i32
    %c0_i32_0 = arith.constant 0 : i32
    %c0_i32_1 = arith.constant 0 : i32
    return %c0_i32, %c0_i32_0 : i32, i32
  }
  func.func @transform_3(%arg0: i32, %arg1: i32) -> (i32, i32) {
    %c0_i32 = arith.constant 0 : i32
    %c0_i32_0 = arith.constant 0 : i32
    %c0_i32_1 = arith.constant 0 : i32
    return %c0_i32, %c0_i32_0 : i32, i32
  }
  func.func @transform_4(%arg0: i32, %arg1: i32) -> (i32, i32, i32, i32) {
    %c0_i32 = arith.constant 0 : i32
    %c0_i32_0 = arith.constant 0 : i32
    %c0_i32_1 = arith.constant 0 : i32
    return %arg0, %arg1, %c0_i32, %c0_i32_0 : i32, i32, i32, i32
  }
}

</mosaic_0001>

<bundles_post_ra>
// kernel: resblock1d_pallas.7
= control target key start
LH: loop header
LB: loop body
LE: loop exit
PB: predicated region body
PF: predicated region fallthrough
CT: control target
= control target key end

     0   :  { %s1029_s0 = inlined_call_operand.vmem [shape: bf16[2,4,128], index: 0, kind: input, shape index: {}]   ;;  %s1030_s1 = inlined_call_operand.vmem [shape: f32[2,4,128], index: 1, kind: input, shape index: {}]   ;;  %s1031_s2 = inlined_call_operand.vmem [shape: f32[4,1], index: 2, kind: input, shape index: {}]   ;;  %s1032_s3 = inlined_call_operand.vmem [shape: f32[4,1], index: 3, kind: input, shape index: {}]   ;;  %s1033_s4 = inlined_call_operand.vmem [shape: bf16[8,4], index: 4, kind: input, shape index: {}]   ;;  %s1034_s5 = inlined_call_operand.vmem [shape: f32[8,1], index: 5, kind: input, shape index: {}]   ;;  %s1035_s6 = inlined_call_operand.vmem [shape: f32[8,1], index: 6, kind: input, shape index: {}]   ;;  %s1036_s7 = inlined_call_operand.vmem [shape: bf16[8,4], index: 7, kind: input, shape index: {}]   ;;  %s1037_s8 = inlined_call_operand.vmem [shape: f32[8,1], index: 8, kind: input, shape index: {}]   ;;  %s1038_s9 = inlined_call_operand.vmem [shape: f32[8,1], index: 9, kind: input, shape index: {}]   ;;  %s1039_s10 = inlined_call_operand.hbm [shape: f32[2,8,128], index: 10, kind: output, shape index: {}]  }
   0x1   :  { %1040 = sst [smem:[#allocation5_spill]] %s1030_s1 }
   0x2   :  { %15 = vsyncpa [#allocation3], 0 }
   0x3   :  { %17 = vsyncpa [#allocation3 + $0x1], 0  ;;  %s886_s13 = smov 0   ;;  %s888_s14 = smov 0  }
   0x4   :  { %s890_s15 = smov 0   ;;  %s892_s16 = smov 0  }
   0x5   :  { %s894_s17 = smov 0   ;;  %s896_s18 = smov 0  }
   0x6 LB: > { %s657_s19 = sadd.s32 4294967295, %s825_s18   ;;  %s658_s20 = sadd.s32 4294967294, %s825_s18   ;;  %s825_s18 = sphi %s896_s18, %s23_s18   ;;  %s821_s17 = sphi %s894_s17, %s1048_s17   ;;  %s817_s16 = sphi %s892_s16, %s1047_s16   ;;  %s813_s15 = sphi %s890_s15, %s1046_s15   ;;  %s809_s14 = sphi %s888_s14, %s1045_s14   ;;  %s805_s13 = sphi %s886_s13, %s1044_s13  }
   0x7   : > { %s35_s21 = sadd.s32 1, %s821_s17  ;;  %s268_s22 = sadd.s32 1, %s813_s15 }
   0x8   : > { %p37_p0 = scmp.ge.s32.totalorder %s35_s21, 2  ;;  %p278_p1 = scmp.ne.s32.totalorder %s813_s15, %s809_s14 }
   0x9   : > { %p279_p2 = scmp.eq.s32.totalorder %s657_s19, 1  ;;  %p284_p3 = scmp.ne.s32.totalorder %s809_s14, %s805_s13 }
   0xa   : > { %s1050_s21 = smov (%p37_p0, %s35_s21), 0  ;;  %p285_p5 = scmp.eq.s32.totalorder %s658_s20, 1 }
   0xb   : > { %p926_p4 = por %p279_p2, %p278_p1  ;;  %s263_s24 = ssub.s32 %s821_s17, %s1050_s21 }
   0xc   : > { %p661_p6 = scmp.ge.s32.totalorder %s825_s18, 1  ;;  %p266_p7 = scmp.eq.s32.totalorder %s263_s24, 0 }
   0xd   : > { %p933_p8 = por %p285_p5, %p284_p3  ;;  %p347_p9 = scmp.lt.s32.totalorder %s825_s18, 3 }
   0xe   : > { %s939_s26 = scalar_select %p266_p7, %s813_s15, %s268_s22  }
   0xf   : > { %p348_p10 = pnand %p661_p6, %p347_p9 }
  0x10   : > { %v411_v0 = vld [vmem:[%s1031_s2] sm:$0xf] (!%p348_p10)  ;;  %v827_v1 = vmov (!%p348_p10), 0   ;;  %p394_p11 = scmp.lt.s32.totalorder (!%p348_p10), %s817_s16, 1  ;;  %v828_v3 = vmov (!%p348_p10), 0.0   ;;  %s1043_s1 = sld [smem:[#allocation5_spill]] (!%p348_p10) }
  0x11   : > { %351 = sbr.rel (%p348_p10) target bundleno = 394 (0x18a), region = 60  ;;  %745 = vset.pattern.permute.xlu0 (!%p348_p10), %v827_v1  ;;  %746 = vset.pattern.permute.xlu1 (!%p348_p10), %v827_v1  ;;  %v418_v2 = vld [vmem:[%s1032_s3] sm:$0xf] (!%p348_p10)  ;;  %vm432_vm0 = vcmask (!%p348_p10), 1041408   ;;  %vm829_vm1 = vmmov (!%p348_p10), 0   ;;  %vm428_vm2 = vcmask (!%p348_p10), 31744  }
  0x12   : > { %414 = vperm.xlu0 (!%p348_p10), %745, %v411_v0   ;;  %681 = vmatprep.subr.bf16.mxu1 (!%p348_p10), %v828_v3  ;;  %v483_v4 = vld [vmem:[%s1035_s6] sm:$0xff] (!%p348_p10)  ;;  %s668_s19 = sshll.u32 (!%p348_p10), %s817_s16, 7 }
  0x13   : > { %675 = vmatprep.subr.bf16.mxu0 (!%p348_p10), %v828_v3  ;;  %683 = vmatprep.mubr.msk.bf16.mxu1 (!%p348_p10), %vm829_vm1, %v828_v3  ;;  %v490_v8 = vld [vmem:[%s1036_s7] sm:$0xf] (!%p348_p10)  ;;  %s982_s28 = scalar_lea.hbm (!%p348_p10), %s1039_s10, %s668_s19 }
  0x14   : > { %677 = vmatprep.mubr.msk.bf16.mxu0 (!%p348_p10), %vm829_vm1, %v828_v3  ;;  %v476_v9 = vld [vmem:[%s1034_s5] sm:$0xff] (!%p348_p10) }
  0x15   : > { %479 = vperm.xlu1 (!%p348_p10), %746, %v476_v9   ;;  %v539_v10 = vld [vmem:[%s1037_s8] sm:$0xff] (!%p348_p10) }
  0x16   : > { %421 = vperm.xlu0 (!%p348_p10), %745, %v418_v2   ;;  %v546_v11 = vld [vmem:[%s1038_s9] sm:$0xff] (!%p348_p10) }
  0x17   : > { %v426_v21 = vld [vmem:[%s1033_s4] sm:$0xf] (!%p348_p10) }
  0x18   : > { %s395_s11 = scalar_select %p394_p11, %s817_s16, 1 }
  0x19   : > { %542 = vperm.xlu1 %746, %v539_v10   ;;  %s830_s16 = smov [#allocation2]  }
  0x1a   : > { %s664_s12 = sshll.u32 %s395_s11, 2  ;;  %486 = vperm.xlu0 %745, %v483_v4   ;;  %s663_s27 = sshll.u32 %s395_s11, 1 }
  0x1b   : > { %s407_s22 = scalar_lea.vmem %s1043_s1, %s664_s12  ;;  %s400_s1 = scalar_lea.vmem %s1029_s0, %s663_s27 }
  0x1c   : > { %v491_v5 = vld [vmem:[%s407_s22] sm:$0xf]  ;;  %s751_s12 = sshll.u32 %s830_s16, 4  ;;  %s752_s12 = int_to_ptr.vmem [resolvable:$false] %s751_s12 }
  0x1d   : > { %v492_v6 = vpack.c.bf16 %v491_v5, %v491_v5  ;;  %549 = vperm.xlu1 %746, %v546_v11   ;;  %v409_v12 = vld [vmem:[%s400_s1] sm:$0x3]  ;;  %s391_s1 = sand.u32 1, %s809_s14  }
  0x1e   : > { %v410_v13 = vunpack.c.l.bf16 %v409_v12  ;;  %s662_s11 = sshll.u32 %s391_s1, 3  ;;  %s557_s29 = scalar_lea.sflag [#allocation3], %s391_s1 }
  0x1f   : > { %v497_v7 = vsel %vm432_vm0, %v492_v6, 0  ;;  %s393_s20 = scalar_lea.vmem [#allocation2], %s662_s11  ;;  %s753_s11 = scalar_lea.vmem %s752_s12, 256 }
  0x20   : > { %682 = vmatpush3.bf16.msra.mxu1 %v497_v7  ;;  %s571_s22 = sshll.u32 %s393_s20, 4  ;;  %s984_s22 = int_to_ptr.vmem [resolvable:$true] %s571_s22 }
  0x21   : > { %s747_s30 = scalar_lea.vmem %s984_s22, 128  ;;  %p754_p1 = scmp.lt.s32.totalorder %s984_s22, %s752_s12 }
  0x22   : > { %p748_p12 = scmp.ne.s32.totalorder %s984_s22, %s747_s30  ;;  %p755_p2 = scmp.lt.s32.totalorder %s753_s11, %s747_s30 }
  0x23   : > { %684 = vmatmul.mubr.msk.bf16.vlgmr.msra.gmra.mrb[0].mxu1 %vm428_vm2, %v490_v8 }
  0x24   : > { %p749_p13 = pnand %p748_p12, %p926_p4  ;;  %p756_p3 = por %p755_p2, %p754_p1 }
  0x26   : > { %p750_p0 = pneg %p749_p13 }
  0x28   : > { %p757_p5 = pnand %p756_p3, %p750_p0 }
  0x91   : > { %v415_v14 = vpop.permute.xlu0 %414 }
  0x92   : > { %v417_v15 = vmul.f32 %v415_v14, %v410_v13 }
  0x94   : > { %v480_v26 = vpop.permute.xlu1 %479 }
  0x95   : > { %v422_v16 = vpop.permute.xlu0 %421 }
  0x96   : > { %v424_v17 = vadd.f32 %v422_v16, %v417_v15 }
  0x98   : > { %v425_v18 = vmax.f32 %v424_v17, 0.0  ;;  %v543_v27 = vpop.permute.xlu1 %542 }
  0x99   : > { %v487_v33 = vpop.permute.xlu0 %486 }
  0x9a   : > { %v427_v19 = vpack.c.bf16 %v425_v18, %v425_v18 }
  0x9c   : > { %v434_v20 = vsel %vm432_vm0, %v427_v19, 0  ;;  %v550_v29 = vpop.permute.xlu1 %549 }
  0x9d   : > { %676 = vmatpush3.bf16.msra.mxu0 %v434_v20 }
  0xa0   : > { %678 = vmatmul.mubr.msk.bf16.vlgmr.msra.gmra.mrb[0].mxu0 %vm428_vm2, %v426_v21 }
  0xf6   : > { %v533_v22 = vpop.f32.mrb[0].mxu1 }
  0xf7   : > { %v685_v23 = vpop.f32.mrb[1].mxu1  ;;  %v545_v28 = vmul.f32 %v543_v27, %v533_v22 }
  0xf8   : > { %v536_v24 = vpop.f32.mrb[2].mxu1 }
  0xf9   : > { %v686_v25 = vpop.f32.mrb[3].mxu1  ;;  %v552_v35 = vadd.f32 %v550_v29, %v545_v28 }
 0x173   : > { %v470_v30 = vpop.f32.mrb[0].mxu0 }
 0x174   : > { %v482_v31 = vmul.f32 %v480_v26, %v470_v30  ;;  %v679_v32 = vpop.f32.mrb[1].mxu0 }
 0x175   : > { %v473_v34 = vpop.f32.mrb[2].mxu0 }
 0x176   : > { %v489_v36 = vadd.f32 %v487_v33, %v482_v31  ;;  %v680_v37 = vpop.f32.mrb[3].mxu0 }
 0x178   : > { %v553_v38 = vadd.f32 %v552_v35, %v489_v36 }
 0x17a   : > { %v554_v39 = vmax.f32 %v553_v38, 0.0 }
 0x17c   : > { %555 = vst [vmem:[%s393_s20] sm:$0xff] %v554_v39 }
 0x17d   : > { %760 = shalt.err (!%p757_p5)
}
 0x17e   : > { %s761_s1 = scalar_lea.hbm %s982_s28, 128  ;;  %s765_s24 = scalar_lea.hbm %s1039_s10, 256 }
 0x17f   : > { %p762_p6 = scmp.ne.s32.totalorder %s982_s28, %s761_s1  ;;  %p766_p10 = scmp.lt.u32.totalorder %s982_s28, %s1039_s10 }
 0x180   : > { %p767_p11 = scmp.lt.u32.totalorder %s765_s24, %s761_s1  ;;  %p769_p13 = scmp.lt.u32.totalorder %s761_s1, %s982_s28 }
 0x181   : > { %p763_p7 = pnand %p762_p6, %p926_p4 }
 0x182   : > { %p768_p12 = por %p767_p11, %p766_p10 }
 0x183   : > { %p764_p9 = pneg %p763_p7 }
 0x184   : > { %p770_p0 = por %p769_p13, %p768_p12 }
 0x186   : > { %p771_p1 = pnand %p770_p0, %p764_p9 }
 0x188   : > { %774 = shalt.err (!%p771_p1)
}
 0x189   : > { %687 = dma.vmem_to_hbm [thread:$0]  (%p926_p4), %s984_s22, 128, %s982_s28, %s557_s29  }
 0x18a PF: > { %p693_p2 = scmp.ge.s32.totalorder %s825_s18, 2  ;;  %s583_s30 = sand.u32 1, %s805_s13  }
 0x18b   : > { %s584_s12 = scalar_lea.sflag [#allocation3], %s583_s30 }
 0x18c   : > { %p690_p3 = pnand %p693_p2, %p933_p8 }
 0x18e   : > { %800 = dma.done.wait (!%p690_p3), %s584_s12, 128  }
 0x18f   : > { %802 = vsyncadd (!%p690_p3), %s584_s12, 4294967168  ;;  %s23_s18 = sadd.s32 1, %s825_s18   ;;  %s1044_s13 = smov %s809_s14 }
 0x190   : > { %p20_p5 = scmp.ge.s32.totalorder %s23_s18, 4   ;;  %s1045_s14 = smov %s813_s15 }
 0x191   : > { %s1046_s15 = smov %s939_s26  ;;  %s1047_s16 = smov %s821_s17 }
 0x192   : > { %s1048_s17 = smov %s1050_s21  ;;  %22 = sbr.rel (!%p20_p5) target bundleno = 6 (0x6), region = 98 }
 0x199   :  { %589 = vsyncpa [#allocation3], 1 }
 0x19a   :  { %591 = vsyncpa [#allocation3 + $0x1], 1 }

// kernel: resblock1d_pallas.4
= control target key start
LH: loop header
LB: loop body
LE: loop exit
PB: predicated region body
PF: predicated region fallthrough
CT: control target
= control target key end

     0   :  { %s673_s18 = smov 0   ;;  %s675_s19 = smov 0   ;;  %s729_s0 = inlined_call_operand.vmem [shape: f32[2,4,128], index: 0, kind: input, shape index: {}]   ;;  %s730_s1 = inlined_call_operand.vmem [shape: bf16[4,4], index: 1, kind: input, shape index: {}]   ;;  %s731_s2 = inlined_call_operand.vmem [shape: bf16[8,4], index: 2, kind: input, shape index: {}]   ;;  %s732_s3 = inlined_call_operand.vmem [shape: bf16[2,4,128], index: 3, kind: output, shape index: {0}]   ;;  %s733_s4 = inlined_call_operand.vmem [shape: f32[2,1,4,2], index: 4, kind: output, shape index: {1}]   ;;  %s734_s5 = inlined_call_operand.vmem [shape: f32[2,1,8,2], index: 5, kind: output, shape index: {2}]  }
   0x1   :  { %s677_s20 = smov 0  }
   0x2 LB: > { %s28_s21 = sadd.s32 1, %s635_s19  ;;  %p566_p0 = scmp.ge.s32.totalorder %s639_s20, 1  ;;  %s639_s20 = sphi %s677_s20, %s16_s20   ;;  %s635_s19 = sphi %s675_s19, %s736_s19   ;;  %s631_s18 = sphi %s673_s18, %s735_s18  }
   0x3   : > { %p30_p1 = scmp.ge.s32.totalorder %s28_s21, 2  ;;  %p214_p2 = scmp.lt.s32.totalorder %s639_s20, 3 }
   0x5   : > { %s738_s21 = smov (%p30_p1, %s28_s21), 0  ;;  %p215_p3 = pnand %p566_p0, %p214_p2 }
   0x6   : > { %p260_p4 = scmp.lt.s32.totalorder (!%p215_p3), %s631_s18, 1  ;;  %v641_v0 = vmov (!%p215_p3), 0.0   ;;  %vm642_vm0 = vmmov (!%p215_p3), 0   ;;  %vm296_vm1 = vcmask (!%p215_p3), 1041408   ;;  %v291_v4 = vld [vmem:[%s730_s1] sm:$0x3] (!%p215_p3) }
   0x7   : > { %218 = sbr.rel (%p215_p3) target bundleno = 385 (0x181), region = 32  ;;  %579 = vmatprep.subr.bf16.mxu0 (!%p215_p3), %v641_v0  ;;  %585 = vmatprep.subr.bf16.mxu1 (!%p215_p3), %v641_v0  ;;  %vm292_vm2 = vcmask (!%p215_p3), 31744   ;;  %v354_v5 = vld [vmem:[%s731_s2] sm:$0xf] (!%p215_p3)  ;;  %vm342_vm3 = vcmask (!%p215_p3), 1043456   ;;  %vm350_vm4 = vcmask (!%p215_p3), 7168  }
   0x8   : > { %581 = vmatprep.mubr.msk.bf16.mxu0 (!%p215_p3), %vm642_vm0, %v641_v0  ;;  %587 = vmatprep.mubr.msk.bf16.mxu1 (!%p215_p3), %vm642_vm0, %v641_v0  ;;  %vm404_vm5 = vcmask (!%p215_p3), 15360   ;;  %vm352_vm6 = vcmask (!%p215_p3), 11264  }
   0xe   : > { %s740_s18 = smov (!%p260_p4, %s631_s18), 1 }
   0xf   : > { %s567_s22 = sshll.u32 %s740_s18, 2  ;;  %s568_s30 = sshll.u32 %s740_s18, 1 }
  0x10   : > { %s266_s25 = scalar_lea.vmem %s729_s0, %s567_s22  ;;  %s273_s8 = scalar_lea.vmem %s732_s3, %s568_s30 }
  0x11   : > { %v289_v1 = vld [vmem:[%s266_s25] sm:$0xf]  ;;  %s570_s9 = sshll.u32 %s740_s18, 3  ;;  %s280_s15 = scalar_lea.vmem %s733_s4, %s567_s22 }
  0x12   : > { %v290_v2 = vpack.c.bf16 %v289_v1, %v289_v1  ;;  %s287_s12 = scalar_lea.vmem %s734_s5, %s570_s9 }
  0x14   : > { %v298_v3 = vsel %vm296_vm1, %v290_v2, 0 }
  0x15   : > { %580 = vmatpush3.bf16.msra.mxu0 %v298_v3  ;;  %586 = vmatpush3.bf16.msra.mxu1 %v298_v3 }
  0x18   : > { %582 = vmatmul.mubr.msk.bf16.vlgmr.msra.gmra.mrb[0].mxu0 %vm292_vm2, %v291_v4  ;;  %588 = vmatmul.mubr.msk.bf16.vlgmr.msra.gmra.mrb[0].mxu1 %vm292_vm2, %v354_v5 }
  0xeb   : > { %v334_v6 = vpop.f32.mrb[0].mxu0  ;;  %v392_v7 = vpop.f32.mrb[0].mxu1 }
  0xec   : > { %v340_v8 = vpack.c.bf16 %v334_v6, %v334_v6  ;;  %398 = vadd.xlane.f32.xlu1 %v392_v7  ;;  %v583_v9 = vpop.f32.mrb[1].mxu0  ;;  %v589_v10 = vpop.f32.mrb[1].mxu1  ;;  %v343_v11 = vsel %vm342_vm3, %v334_v6, 0.0  ;;  %v400_v12 = vmul.f32 %v392_v7, %v392_v7  ;;  %v346_v13 = vmul.f32 %v334_v6, %v334_v6 }
  0xed   : > { %v395_v14 = vpop.f32.mrb[2].mxu1  ;;  %344 = vadd.xlane.f32.xlu0 %v343_v11  ;;  %v337_v15 = vpop.f32.mrb[2].mxu0 }
  0xee   : > { %341 = vst [vmem:[%s273_s8] sm:$0x3] %v340_v8  ;;  %v584_v16 = vpop.f32.mrb[3].mxu0  ;;  %v590_v17 = vpop.f32.mrb[3].mxu1  ;;  %v347_v18 = vsel %vm342_vm3, %v346_v13, 0.0 }
  0xf0   : > { %401 = vadd.xlane.f32.xlu1 %v400_v12 }
  0xf1   : > { %348 = vadd.xlane.f32.xlu0 %v347_v18 }
 0x179   : > { %v399_v19 = vpop.xlane.xlu1 %398 }
 0x17a   : > { %v345_v20 = vpop.xlane.xlu0 %344 }
 0x17d   : > { %v402_v21 = vpop.xlane.xlu1 %401 }
 0x17e   : > { %v403_v22 = vsel %vm350_vm4, %v399_v19, %v402_v21  ;;  %v349_v23 = vpop.xlane.xlu0 %348 }
 0x17f   : > { %405 = vst.msk [vmem:[%s287_s12] sm:$0xff] %vm404_vm5, %v403_v22  ;;  %v351_v24 = vsel %vm350_vm4, %v345_v20, %v349_v23 }
 0x180   : > { %353 = vst.msk [vmem:[%s280_s15] sm:$0xf] %vm352_vm6, %v351_v24 }
 0x181 PF: > { %s16_s20 = sadd.s32 1, %s639_s20   ;;  %s735_s18 = smov %s635_s19 }
 0x182   : > { %p13_p5 = scmp.ge.s32.totalorder %s16_s20, 4   ;;  %s736_s19 = smov %s738_s21 }
 0x184   :  { %15 = sbr.rel (!%p13_p5) target bundleno = 2 (0x2), region = 86 }

// kernel: resblock1d_pallas.5
= control target key start
LH: loop header
LB: loop body
LE: loop exit
PB: predicated region body
PF: predicated region fallthrough
CT: control target
= control target key end

     0   :  { %s948_s24 = smov 0   ;;  %s950_s1 = smov 0   ;;  %s1018_s0 = inlined_call_operand.vmem [shape: bf16[2,4,128], index: 0, kind: input, shape index: {}, may-alias: {0,1,2}]   ;;  %s1019_s1 = inlined_call_operand.vmem [shape: bf16[2,4,128], index: 1, kind: input, shape index: {}, may-alias: {0,1,2}]   ;;  %s1020_s2 = inlined_call_operand.vmem [shape: bf16[2,4,128], index: 2, kind: input, shape index: {}, may-alias: {0,1,2}]   ;;  %s1021_s3 = inlined_call_operand.vmem [shape: f32[4,1], index: 3, kind: input, shape index: {}]   ;;  %s1022_s4 = inlined_call_operand.vmem [shape: f32[4,1], index: 4, kind: input, shape index: {}]   ;;  %s1023_s5 = inlined_call_operand.vmem [shape: bf16[3,4,4], index: 5, kind: input, shape index: {}]   ;;  %s1024_s6 = inlined_call_operand.vmem [shape: bf16[2,4,128], index: 6, kind: output, shape index: {0}]   ;;  %s1025_s7 = inlined_call_operand.vmem [shape: f32[2,1,4,2], index: 7, kind: output, shape index: {1}]  }
   0x1   :  { %s952_s2 = smov 0  }
   0x2 LB: > { %s30_s25 = sadd.s32 1, %s896_s1  ;;  %p805_p0 = scmp.ge.s32.totalorder %s900_s2, 1  ;;  %s900_s2 = sphi %s952_s2, %s18_s2   ;;  %s896_s1 = sphi %s950_s1, %s1027_s1   ;;  %s892_s24 = sphi %s948_s24, %s1026_s24  }
   0x3   : > { %p32_p1 = scmp.ge.s32.totalorder %s30_s25, 2  ;;  %p312_p2 = scmp.lt.s32.totalorder %s900_s2, 3 }
   0x5   : > { %s1029_s25 = smov (%p32_p1, %s30_s25), 0  ;;  %p313_p3 = pnand %p805_p0, %p312_p2 }
   0x6   : > { %v430_v0 = vld [vmem:[%s1021_s3] sm:$0xf] (!%p313_p3)  ;;  %v902_v1 = vmov (!%p313_p3), 0   ;;  %v903_v3 = vmov (!%p313_p3), 0.0|0.0   ;;  %s904_s30 = smov (!%p313_p3), 1   ;;  %v905_v4 = vmov (!%p313_p3), 0.0  }
   0x7   : > { %316 = sbr.rel (%p313_p3) target bundleno = 639 (0x27f), region = 44  ;;  %877 = vset.pattern.permute.xlu0 (!%p313_p3), %v902_v1  ;;  %v439_v2 = vld [vmem:[%s1022_s4] sm:$0xf] (!%p313_p3)  ;;  %534 = vrot.lane.b32.xlu1 (!%p313_p3), %v903_v3, %s904_s30  ;;  %p375_p4 = scmp.lt.s32.totalorder (!%p313_p3), %s892_s24, 1  ;;  %vm906_vm0 = vmmov (!%p313_p3), 0   ;;  %vm488_vm1 = vcmask (!%p313_p3), 1041408  }
   0x8   : > { %433 = vperm.xlu0 (!%p313_p3), %877, %v430_v0   ;;  %824 = vmatprep.subr.bf16.mxu1 (!%p313_p3), %v905_v4  ;;  %s907_s12 = smov (!%p313_p3), 127   ;;  %v811_v14 = vld [vmem:[%s1023_s5 + $0x2] sm:$0x3] (!%p313_p3)  ;;  %vm484_vm2 = vcmask (!%p313_p3), 31744   ;;  %vm538_vm3 = vcmask (!%p313_p3), 7168   ;;  %vm593_vm4 = vcmask (!%p313_p3), 1039360  }
   0x9   : > { %830 = vmatprep.subr.bf16.mxu0 (!%p313_p3), %v905_v4  ;;  %832 = vmatprep.mubr.msk.bf16.mxu0 (!%p313_p3), %vm906_vm0, %v905_v4  ;;  %v481_v19 = vld [vmem:[%s1023_s5] sm:$0x3] (!%p313_p3)  ;;  %v814_v24 = vld [vmem:[%s1023_s5 + $0x4] sm:$0x3] (!%p313_p3)  ;;  %vm644_vm5 = vcmask (!%p313_p3), 1043456   ;;  %vm654_vm6 = vcmask (!%p313_p3), 11264  }
   0xa   : > { %826 = vmatprep.mubr.msk.bf16.mxu1 (!%p313_p3), %vm906_vm0, %v905_v4 }
   0xc   : > { %442 = vperm.xlu0 (!%p313_p3), %877, %v439_v2  }
   0xe   : > { %s1031_s24 = smov (!%p375_p4, %s892_s24), 1 }
   0xf   : > { %s806_s8 = sshll.u32 %s1031_s24, 1  ;;  %s810_s22 = sshll.u32 %s1031_s24, 2 }
  0x10   : > { %s381_s11 = scalar_lea.vmem %s1018_s0, %s806_s8  ;;  %s414_s21 = scalar_lea.vmem %s1024_s6, %s806_s8 }
  0x11   : > { %v425_v5 = vld [vmem:[%s381_s11] sm:$0x3]  ;;  %s421_s27 = scalar_lea.vmem %s1025_s7, %s810_s22 }
  0x12   : > { %v428_v6 = vunpack.c.l.bf16 %v425_v5 }
  0x79   : > { %v535_v15 = vpop.permute.xlu1 %534 }
  0x87   : > { %v434_v7 = vpop.permute.xlu0 %433 }
  0x88   : > { %v437_v8 = vmul.f32 %v434_v7, %v428_v6 }
  0x8b   : > { %v443_v9 = vpop.permute.xlu0 %442 }
  0x8c   : > { %v446_v10 = vadd.f32 %v443_v9, %v437_v8 }
  0x8e   : > { %v449_v11 = vmax.f32 %v446_v10, 0.0 }
  0x90   : > { %v479_v12 = vpack.c.bf16 %v449_v11, %v449_v11 }
  0x92   : > { %589 = vrot.lane.b32.xlu0 %v479_v12, %s907_s12  ;;  %536 = vrot.lane.b32.xlu1 %v479_v12, %s904_s30  ;;  %v490_v13 = vsel %vm488_vm1, %v479_v12, 0 }
  0x93   : > { %825 = vmatpush3.bf16.msra.mxu1 %v490_v13 }
  0x96   : > { %591 = vrot.lane.b32.xlu1 %v903_v3, %s907_s12  ;;  %827 = vmatmul.mubr.msk.bf16.vlgmr.msra.gmra.mrb[0].mxu1 %vm484_vm2, %v811_v14 }
 0x104   : > { %v537_v16 = vpop.permute.xlu1 %536  ;;  %v590_v20 = vpop.permute.xlu0 %589 }
 0x105   : > { %v539_v17 = vsel %vm538_vm3, %v535_v15, %v537_v16 }
 0x106   : > { %v544_v18 = vsel %vm488_vm1, %v539_v17, 0 }
 0x107   : > { %831 = vmatpush3.bf16.msra.mxu0 %v544_v18 }
 0x108   : > { %v592_v21 = vpop.permute.xlu1 %591  ;;  %836 = vmatprep.subr.bf16.mxu0 %v905_v4 }
 0x109   : > { %v594_v22 = vsel %vm593_vm4, %v590_v20, %v592_v21 }
 0x10a   : > { %v599_v23 = vsel %vm488_vm1, %v594_v22, 0  ;;  %833 = vmatmul.mubr.msk.bf16.vlgmr.msra.gmra.mrb[0].mxu0 %vm484_vm2, %v481_v19 }
 0x10b   : > { %837 = vmatpush3.bf16.msra.mxu0 %v599_v23  ;;  %838 = vmatprep.mubr.msk.bf16.mxu0 %vm906_vm0, %v905_v4 }
 0x116   : > { %839 = vmatmul.mubr.msk.bf16.vlgmr.msra.gmra.mrb[0].mxu0 %vm484_vm2, %v814_v24 }
 0x169   : > { %v526_v25 = vpop.f32.mrb[0].mxu1 }
 0x16a   : > { %v828_v26 = vpop.f32.mrb[1].mxu1 }
 0x16b   : > { %v529_v27 = vpop.f32.mrb[2].mxu1 }
 0x16c   : > { %v829_v28 = vpop.f32.mrb[3].mxu1 }
 0x1e9   : > { %v635_v29 = vpop.f32.mrb[0].mxu0 }
 0x1ea   : > { %v842_v30 = vadd.f32 %v635_v29, %v526_v25  ;;  %v840_v31 = vpop.f32.mrb[1].mxu0 }
 0x1eb   : > { %v638_v32 = vpop.f32.mrb[2].mxu0 }
 0x1ec   : > { %v642_v33 = vpack.c.bf16 %v842_v30, %v842_v30  ;;  %v841_v34 = vpop.f32.mrb[3].mxu0  ;;  %v645_v35 = vsel %vm644_vm5, %v842_v30, 0.0  ;;  %v648_v36 = vmul.f32 %v842_v30, %v842_v30 }
 0x1ed   : > { %646 = vadd.xlane.f32.xlu0 %v645_v35 }
 0x1ee   : > { %643 = vst [vmem:[%s414_s21] sm:$0x3] %v642_v33  ;;  %v649_v37 = vsel %vm644_vm5, %v648_v36, 0.0 }
 0x1ef   : > { %650 = vadd.xlane.f32.xlu1 %v649_v37 }
 0x27a   : > { %v647_v38 = vpop.xlane.xlu0 %646 }
 0x27c   : > { %v651_v39 = vpop.xlane.xlu1 %650 }
 0x27d   : > { %v653_v40 = vsel %vm538_vm3, %v647_v38, %v651_v39 }
 0x27e   : > { %655 = vst.msk [vmem:[%s421_s27] sm:$0xf] %vm654_vm6, %v653_v40 }
 0x27f PF: > { %s18_s2 = sadd.s32 1, %s900_s2   ;;  %s1026_s24 = smov %s896_s1 }
 0x280   : > { %p15_p5 = scmp.ge.s32.totalorder %s18_s2, 4   ;;  %s1027_s1 = smov %s1029_s25 }
 0x282   :  { %17 = sbr.rel (!%p15_p5) target bundleno = 2 (0x2), region = 94 }

// kernel: resblock1d_pallas.6
= control target key start
LH: loop header
LB: loop body
LE: loop exit
PB: predicated region body
PF: predicated region fallthrough
CT: control target
= control target key end

     0   :  { %s473_s15 = smov 0   ;;  %s475_s16 = smov 0   ;;  %s515_s0 = inlined_call_operand.vmem [shape: bf16[2,4,128], index: 0, kind: input, shape index: {}]   ;;  %s516_s1 = inlined_call_operand.vmem [shape: f32[4,1], index: 1, kind: input, shape index: {}]   ;;  %s517_s2 = inlined_call_operand.vmem [shape: f32[4,1], index: 2, kind: input, shape index: {}]   ;;  %s518_s3 = inlined_call_operand.vmem [shape: bf16[8,4], index: 3, kind: input, shape index: {}]   ;;  %s519_s4 = inlined_call_operand.vmem [shape: f32[2,1,8,2], index: 4, kind: output, shape index: {}]  }
   0x1   :  { %s477_s17 = smov 0  }
   0x2 LB: > { %s26_s18 = sadd.s32 1, %s439_s16  ;;  %p379_p0 = scmp.ge.s32.totalorder %s443_s17, 1  ;;  %s443_s17 = sphi %s477_s17, %s14_s17   ;;  %s439_s16 = sphi %s475_s16, %s521_s16   ;;  %s435_s15 = sphi %s473_s15, %s520_s15  }
   0x3   : > { %p28_p1 = scmp.ge.s32.totalorder %s26_s18, 2  ;;  %p180_p2 = scmp.lt.s32.totalorder %s443_s17, 3 }
   0x5   : > { %s523_s18 = smov (%p28_p1, %s26_s18), 0  ;;  %p181_p3 = pnand %p379_p0, %p180_p2 }
   0x6   : > { %v227_v0 = vld [vmem:[%s516_s1] sm:$0xf] (!%p181_p3)  ;;  %v445_v1 = vmov (!%p181_p3), 0   ;;  %v446_v3 = vmov (!%p181_p3), 0.0   ;;  %vm447_vm0 = vmmov (!%p181_p3), 0   ;;  %p210_p4 = scmp.lt.s32.totalorder (!%p181_p3), %s435_s15, 1 }
   0x7   : > { %184 = sbr.rel (%p181_p3) target bundleno = 510 (0x1fe), region = 36  ;;  %420 = vset.pattern.permute.xlu0 (!%p181_p3), %v445_v1  ;;  %v234_v2 = vld [vmem:[%s517_s2] sm:$0xf] (!%p181_p3)  ;;  %387 = vmatprep.subr.bf16.mxu0 (!%p181_p3), %v446_v3  ;;  %vm248_vm1 = vcmask (!%p181_p3), 1041408   ;;  %vm244_vm2 = vcmask (!%p181_p3), 31744   ;;  %vm297_vm3 = vcmask (!%p181_p3), 7168  }
   0x8   : > { %230 = vperm.xlu0 (!%p181_p3), %420, %v227_v0   ;;  %389 = vmatprep.mubr.msk.bf16.mxu0 (!%p181_p3), %vm447_vm0, %v446_v3  ;;  %v242_v13 = vld [vmem:[%s518_s3] sm:$0xf] (!%p181_p3)  ;;  %vm299_vm4 = vcmask (!%p181_p3), 15360  }
   0xc   : > { %237 = vperm.xlu0 (!%p181_p3), %420, %v234_v2  }
   0xe   : > { %s525_s15 = smov (!%p210_p4, %s435_s15), 1 }
   0xf   : > { %s380_s23 = sshll.u32 %s525_s15, 1  ;;  %s381_s29 = sshll.u32 %s525_s15, 3 }
  0x10   : > { %s216_s26 = scalar_lea.vmem %s515_s0, %s380_s23  ;;  %s223_s6 = scalar_lea.vmem %s519_s4, %s381_s29 }
  0x11   : > { %v225_v4 = vld [vmem:[%s216_s26] sm:$0x3] }
  0x12   : > { %v226_v5 = vunpack.c.l.bf16 %v225_v4 }
  0x87   : > { %v231_v6 = vpop.permute.xlu0 %230 }
  0x88   : > { %v233_v7 = vmul.f32 %v231_v6, %v226_v5 }
  0x8b   : > { %v238_v8 = vpop.permute.xlu0 %237 }
  0x8c   : > { %v240_v9 = vadd.f32 %v238_v8, %v233_v7 }
  0x8e   : > { %v241_v10 = vmax.f32 %v240_v9, 0.0 }
  0x90   : > { %v243_v11 = vpack.c.bf16 %v241_v10, %v241_v10 }
  0x92   : > { %v250_v12 = vsel %vm248_vm1, %v243_v11, 0 }
  0x93   : > { %388 = vmatpush3.bf16.msra.mxu0 %v250_v12 }
  0x96   : > { %390 = vmatmul.mubr.msk.bf16.vlgmr.msra.gmra.mrb[0].mxu0 %vm244_vm2, %v242_v13 }
 0x169   : > { %v286_v14 = vpop.f32.mrb[0].mxu0 }
 0x16a   : > { %292 = vadd.xlane.f32.xlu1 %v286_v14  ;;  %v391_v15 = vpop.f32.mrb[1].mxu0  ;;  %v294_v18 = vmul.f32 %v286_v14, %v286_v14 }
 0x16b   : > { %v289_v16 = vpop.f32.mrb[2].mxu0 }
 0x16c   : > { %v392_v17 = vpop.f32.mrb[3].mxu0 }
 0x16e   : > { %295 = vadd.xlane.f32.xlu1 %v294_v18 }
 0x1f7   : > { %v293_v19 = vpop.xlane.xlu1 %292 }
 0x1fb   : > { %v296_v20 = vpop.xlane.xlu1 %295 }
 0x1fc   : > { %v298_v21 = vsel %vm297_vm3, %v293_v19, %v296_v20 }
 0x1fd   : > { %300 = vst.msk [vmem:[%s223_s6] sm:$0xff] %vm299_vm4, %v298_v21 }
 0x1fe PF: > { %s14_s17 = sadd.s32 1, %s443_s17   ;;  %s520_s15 = smov %s439_s16 }
 0x1ff   : > { %p11_p5 = scmp.ge.s32.totalorder %s14_s17, 4   ;;  %s521_s16 = smov %s523_s18 }
 0x201   :  { %13 = sbr.rel (!%p11_p5) target bundleno = 2 (0x2), region = 66 }

</bundles_post_ra>
